<compile_context>
chip_gen: v6e
topology: v6e:2x2x1
jax: 0.10.0
libtpu: 0.0.40
codegen_flags: <defaults>
</compile_context>

<pallas_src>
import functools
import math

import jax
import jax.numpy as jnp
from jax.experimental import pallas as pl
from jax.experimental.pallas import tpu as pltpu

F32 = jnp.float32


# ----------------------------- kernel helpers ------------------------------ #

def _bn(x, gamma, beta, eps):
    """BatchNorm1d (training-mode stats) in ONE pass: var = E[x^2] - mean^2."""
    mean = jnp.mean(x, axis=0, keepdims=True)
    ex2 = jnp.mean(x * x, axis=0, keepdims=True)
    var = jnp.maximum(ex2 - mean * mean, 0.0)
    return (x - mean) * (jax.lax.rsqrt(var + eps) * gamma) + beta


def _low_chain(adj_s, y, low_hops):
    """(0.5 * A_s)^k applied to the projected activation y (N, Ep)."""
    a_dt = adj_s.dtype
    for _ in range(low_hops):
        y = jnp.dot(adj_s, y.astype(a_dt), preferred_element_type=F32)
    return y * (0.5 ** low_hops)


def _mid_chain(adj_s, adj_d, y, mid_hops, materialize_mid):
    """(-(A_s @ A_d))^k applied to the projected activation y (N, Ep)."""
    a_dt = adj_s.dtype
    if materialize_mid:
        # Small-N / latency-bound regime: N^3 flops once, then one matmul/hop.
        adj_m = jnp.dot(adj_s, adj_d, preferred_element_type=F32).astype(a_dt)
        for _ in range(mid_hops):
            y = jnp.dot(adj_m, y.astype(a_dt), preferred_element_type=F32)
    else:
        for _ in range(mid_hops):
            t = jnp.dot(adj_d, y.astype(a_dt), preferred_element_type=F32)
            y = jnp.dot(adj_s, t.astype(a_dt), preferred_element_type=F32)
    if mid_hops % 2 == 1:
        y = -y
    return y


def _both_chains(adj_s, adj_d, y_low, y_mid, low_hops, mid_hops, ep,
                 materialize_mid):
    """Run both GCN branches on VMEM-resident activations."""
    a_dt = adj_s.dtype
    if materialize_mid:
        return (_low_chain(adj_s, y_low, low_hops),
                _mid_chain(adj_s, adj_d, y_mid, mid_hops, True))
    # Large-N regime: both branches apply adj_s once per hop.  Stack the low
    # activation and the mid intermediate side-by-side on the lane axis so a
    # single (N, 2*Ep) adj_s matmul serves both (fills the 2x256 MXU on
    # v6e/v7x and halves the adj_s pushes on the dominant serial chain).
    shared = min(low_hops, mid_hops)
    for _ in range(shared):
        t = jnp.dot(adj_d, y_mid.astype(a_dt), preferred_element_type=F32)
        z = jnp.concatenate([y_low, t], axis=1).astype(a_dt)      # (N, 2*Ep)
        z = jnp.dot(adj_s, z, preferred_element_type=F32)
        y_low = z[:, :ep]
        y_mid = z[:, ep:]
    for _ in range(low_hops - shared):
        y_low = jnp.dot(adj_s, y_low.astype(a_dt), preferred_element_type=F32)
    for _ in range(mid_hops - shared):
        t = jnp.dot(adj_d, y_mid.astype(a_dt), preferred_element_type=F32)
        y_mid = jnp.dot(adj_s, t.astype(a_dt), preferred_element_type=F32)
    y_low = y_low * (0.5 ** low_hops)
    if mid_hops % 2 == 1:
        y_mid = -y_mid
    return y_low, y_mid


# ------------------------------ kernel bodies ------------------------------ #

def _concat_kernel(adj_s_ref, adj_d_ref, feat_ref, w_both_ref,
                   g1_ref, b1_ref, g2_ref, b2_ref, wcat_ref, bcat_ref,
                   out_ref, *, low_hops, mid_hops, ep, eps, materialize_mid):
    # Fused input projection: one MXU push producing (N, 2*Ep).
    y = jnp.dot(feat_ref[...], w_both_ref[...], preferred_element_type=F32)
    y_low, y_mid = _both_chains(adj_s_ref[...], adj_d_ref[...],
                                y[:, :ep], y[:, ep:],
                                low_hops, mid_hops, ep, materialize_mid)
    low = _bn(y_low, g1_ref[...], b1_ref[...], eps)
    mid = _bn(y_mid, g2_ref[...], b2_ref[...], eps)
    # nn.Linear(2E, E) epilogue as a single 2*Ep-deep contraction.
    cat = jnp.concatenate([low, mid], axis=1).astype(wcat_ref.dtype)
    out_ref[...] = (jnp.dot(cat, wcat_ref[...], preferred_element_type=F32)
                    + bcat_ref[...])


def _att_kernel(adj_s_ref, adj_d_ref, feat_ref, w_both_ref,
                g1_ref, b1_ref, g2_ref, b2_ref,
                low_ref, mid_ref, *, low_hops, mid_hops, ep, eps,
                materialize_mid):
    y = jnp.dot(feat_ref[...], w_both_ref[...], preferred_element_type=F32)
    y_low, y_mid = _both_chains(adj_s_ref[...], adj_d_ref[...],
                                y[:, :ep], y[:, ep:],
                                low_hops, mid_hops, ep, materialize_mid)
    low_ref[...] = _bn(y_low, g1_ref[...], b1_ref[...], eps)
    mid_ref[...] = _bn(y_mid, g2_ref[...], b2_ref[...], eps)


def _low_kernel(adj_s_ref, feat_ref, w_ref, g_ref, b_ref, out_ref,
                *, low_hops, eps):
    y = jnp.dot(feat_ref[...], w_ref[...], preferred_element_type=F32)
    y = _low_chain(adj_s_ref[...], y, low_hops)
    out_ref[...] = _bn(y, g_ref[...], b_ref[...], eps)


def _mid_kernel(adj_s_ref, adj_d_ref, feat_ref, w_ref, g_ref, b_ref, out_ref,
                *, mid_hops, eps, materialize_mid):
    y = jnp.dot(feat_ref[...], w_ref[...], preferred_element_type=F32)
    y = _mid_chain(adj_s_ref[...], adj_d_ref[...], y, mid_hops, materialize_mid)
    out_ref[...] = _bn(y, g_ref[...], b_ref[...], eps)


# ------------------------------ wrappers ----------------------------------- #

def _round_up(x, m):
    return ((x + m - 1) // m) * m


def _pad_last(x, target):
    pad = target - x.shape[-1]
    if pad == 0:
        return x
    return jnp.pad(x, [(0, 0)] * (x.ndim - 1) + [(0, pad)])


def _compiler_params(args, out_bytes, extra_bytes):
    in_bytes = sum(int(a.size) * a.dtype.itemsize for a in args)
    need = in_bytes + int(out_bytes) + int(extra_bytes)
    limit = int(min(100 * 2**20, max(32 * 2**20, 2 * need + (8 << 20))))
    return pltpu.CompilerParams(vmem_limit_bytes=limit)


_VSPEC = pl.BlockSpec(memory_space=pltpu.MemorySpace.VMEM)  # whole array, un-pipelined


def item_graph_convolution(params, feature, adj, adj_self, adj_dele,
                           mode, low_k, mid_k, *, eps=1e-5,
                           compute_dtype=jnp.float32, adj_dtype=None,
                           materialize_mid=None):
    """Fused forward pass.  `adj` is accepted (PyTorch signature) but unused."""
    del adj
    N, _ = feature.shape
    E = params["w_low"].shape[1]
    Ep = _round_up(max(E, 1), 128)           # lane-dense embedding axis only
    low_hops = max(int(low_k), 1)            # PyTorch always applies >= 1 hop
    mid_hops = max(int(mid_k), 1)
    if adj_dtype is None:
        adj_dtype = compute_dtype
    if materialize_mid is None:
        # Forming A_s @ A_d (N^3 MACs) pays off when cheaper than the per-hop
        # matmuls it removes (~mid_hops * N^2 * Ep MACs) and halves the serial
        # MXU chain for small, latency-bound graphs.
        materialize_mid = N <= mid_hops * Ep

    cdt = compute_dtype
    adj_s = adj_self.astype(adj_dtype)
    adj_d = adj_dele.astype(adj_dtype)
    feat = feature.astype(cdt)                              # F left unpadded

    w_low = _pad_last(params["w_low"], Ep).astype(cdt)      # (F, Ep)
    w_mid = _pad_last(params["w_mid"], Ep).astype(cdt)      # (F, Ep)
    g1 = _pad_last(params["bn1_gamma"], Ep).astype(F32)
    b1 = _pad_last(params["bn1_beta"], Ep).astype(F32)
    g2 = _pad_last(params["bn2_gamma"], Ep).astype(F32)
    b2 = _pad_last(params["bn2_beta"], Ep).astype(F32)

    out_sds = jax.ShapeDtypeStruct((N, Ep), F32)
    extra = 8 * N * 2 * Ep * 4 + 2 * N * N * 4              # in-kernel temporaries

    if mode == "concat":
        w_both = jnp.concatenate([w_low, w_mid], axis=1)    # (F, 2*Ep)
        wc = params["w_cat_t"].astype(F32)                  # (2E, E), pre-transposed
        w_cat = jnp.zeros((2 * Ep, Ep), F32)
        w_cat = w_cat.at[:E, :E].set(wc[:E]).at[Ep:Ep + E, :E].set(wc[E:])
        w_cat = w_cat.astype(cdt)
        b_cat = _pad_last(params["b_cat"], Ep).astype(F32)
        args = (adj_s, adj_d, feat, w_both, g1, b1, g2, b2, w_cat, b_cat)
        out = pl.pallas_call(
            functools.partial(_concat_kernel, low_hops=low_hops,
                              mid_hops=mid_hops, ep=Ep, eps=eps,
                              materialize_mid=materialize_mid),
            out_shape=out_sds,
            in_specs=[_VSPEC] * len(args),
            out_specs=_VSPEC,
            compiler_params=_compiler_params(args, N * Ep * 4, extra),
        )(*args)
        return out[:, :E]

    if mode == "att":
        w_both = jnp.concatenate([w_low, w_mid], axis=1)
        args = (adj_s, adj_d, feat, w_both, g1, b1, g2, b2)
        low, mid = pl.pallas_call(
            functools.partial(_att_kernel, low_hops=low_hops,
                              mid_hops=mid_hops, ep=Ep, eps=eps,
                              materialize_mid=materialize_mid),
            out_shape=(out_sds, out_sds),
            in_specs=[_VSPEC] * len(args),
            out_specs=(_VSPEC, _VSPEC),
            compiler_params=_compiler_params(args, 2 * N * Ep * 4, extra),
        )(*args)
        return jnp.stack([low[:, :E], mid[:, :E]], axis=1)

    if mode == "mid":
        args = (adj_s, adj_d, feat, w_mid, g2, b2)
        out = pl.pallas_call(
            functools.partial(_mid_kernel, mid_hops=mid_hops, eps=eps,
                              materialize_mid=materialize_mid),
            out_shape=out_sds,
            in_specs=[_VSPEC] * len(args),
            out_specs=_VSPEC,
            compiler_params=_compiler_params(args, N * Ep * 4, extra),
        )(*args)
        return out[:, :E]

    # Any other mode string falls through to the low branch (PyTorch else).
    args = (adj_s, feat, w_low, g1, b1)
    out = pl.pallas_call(
        functools.partial(_low_kernel, low_hops=low_hops, eps=eps),
        out_shape=out_sds,
        in_specs=[_VSPEC] * len(args),
        out_specs=_VSPEC,
        compiler_params=_compiler_params(args, N * Ep * 4, extra),
    )(*args)
    return out[:, :E]


# ------------------------------ reference ---------------------------------- #

def _reference(params, feature, adj_self, adj_dele, mode, low_k, mid_k, eps=1e-5):
    """Plain-JAX transcription of the PyTorch forward (training-mode BN)."""
    def bn(x, g, b):
        m = x.mean(0, keepdims=True)
        v = ((x - m) ** 2).mean(0, keepdims=True)
        return (x - m) / jnp.sqrt(v + eps) * g + b

    conv_l = 0.5 * adj_self
    out = conv_l @ feature
    for _ in range(low_k - 1):
        out = conv_l @ out
    low = bn(out @ params["w_low"], params["bn1_gamma"], params["bn1_beta"])

    conv_m = -(adj_self @ adj_dele)
    out = conv_m @ feature
    for _ in range(mid_k - 1):
        out = conv_m @ out
    mid = bn(out @ params["w_mid"], params["bn2_gamma"], params["bn2_beta"])

    if mode == "att":
        return jnp.stack([low, mid], axis=1)
    if mode == "concat":
        return jnp.concatenate([low, mid], axis=1) @ params["w_cat_t"] + params["b_cat"]
    if mode == "mid":
        return mid
    return low


# -------------------------------- main -------------------------------------- #

if __name__ == "__main__":
    N, F, E = 16, 32, 32        # nodes, features_size, embedding_size
    low_k, mid_k = 2, 3

    key = jax.random.PRNGKey(0)
    (k_feat, k_adj, k_self, k_dele, k_wl, k_wm, k_wc, k_bc) = jax.random.split(key, 8)

    feature = jax.random.normal(k_feat, (N, F), dtype=jnp.float32)
    adj = jax.random.uniform(k_adj, (N, N), dtype=jnp.float32)       # unused in forward
    adj_self = jax.random.uniform(k_self, (N, N), dtype=jnp.float32)
    adj_dele = jax.random.uniform(k_dele, (N, N), dtype=jnp.float32)

    stdv = 1.0 / math.sqrt(E)
    lin_bound = 1.0 / math.sqrt(2 * E)
    params = {
        "w_low": jax.random.uniform(k_wl, (F, E), jnp.float32, -stdv, stdv),
        "w_mid": jax.random.uniform(k_wm, (F, E), jnp.float32, -stdv, stdv),
        "bn1_gamma": jnp.ones((1, E), jnp.float32),
        "bn1_beta": jnp.zeros((1, E), jnp.float32),
        "bn2_gamma": jnp.ones((1, E), jnp.float32),
        "bn2_beta": jnp.zeros((1, E), jnp.float32),
        # nn.Linear(2E, E): weight stored pre-transposed as [2E, E].
        "w_cat_t": jax.random.uniform(k_wc, (2 * E, E), jnp.float32,
                                      -lin_bound, lin_bound),
        "b_cat": jax.random.uniform(k_bc, (1, E), jnp.float32,
                                    -lin_bound, lin_bound),
    }

    def run(mode, **kw):
        fn = jax.jit(functools.partial(item_graph_convolution, mode=mode,
                                       low_k=low_k, mid_k=mid_k, **kw))
        return jax.block_until_ready(fn(params, feature, adj, adj_self, adj_dele))

    # f32 correctness for every mode-specialized kernel (default heuristic ->
    # materialized A_s @ A_d path at this small N).
    for mode in ("concat", "att", "mid", "low"):
        out = run(mode)
        ref = _reference(params, feature, adj_self, adj_dele, mode, low_k, mid_k)
        assert out.shape == ref.shape, f"{mode}: shape {out.shape} vs {ref.shape}"
        assert jnp.allclose(out, ref, atol=2e-3, rtol=2e-3), f"{mode} mismatch"

    # Exercise the large-graph path: per-hop A_d/A_s with lane-stacked adj_s matmul.
    ref_cat = _reference(params, feature, adj_self, adj_dele, "concat", low_k, mid_k)
    out_stacked = run("concat", materialize_mid=False)
    assert jnp.allclose(out_stacked, ref_cat, atol=2e-3, rtol=2e-3), "stacked-hop mismatch"

    # bf16-adjacency footprint/throughput lever: loose sanity check only
    # (accuracy of reduced-precision adjacencies must be qualified per app).
    out_bf16 = run("concat", adj_dtype=jnp.bfloat16)
    rel = jnp.linalg.norm(out_bf16 - ref_cat) / jnp.linalg.norm(ref_cat)
    assert bool(jnp.isfinite(out_bf16).all()), "bf16 path produced non-finite values"
    assert float(rel) < 0.25, f"bf16 path too far off: rel={float(rel):.3f}"

    print("KERNEL_OK")
</pallas_src>

<mosaic_0001>
module attributes {stable_mosaic.version = 11 : i64} {
  func.func @_concat_kernel(%arg0: memref<16x16xf32, #tpu.memory_space<vmem>>, %arg1: memref<16x16xf32, #tpu.memory_space<vmem>>, %arg2: memref<16x32xf32, #tpu.memory_space<vmem>>, %arg3: memref<32x256xf32, #tpu.memory_space<vmem>>, %arg4: memref<1x128xf32, #tpu.memory_space<vmem>>, %arg5: memref<1x128xf32, #tpu.memory_space<vmem>>, %arg6: memref<1x128xf32, #tpu.memory_space<vmem>>, %arg7: memref<1x128xf32, #tpu.memory_space<vmem>>, %arg8: memref<256x128xf32, #tpu.memory_space<vmem>>, %arg9: memref<1x128xf32, #tpu.memory_space<vmem>>, %arg10: memref<16x128xf32, #tpu.memory_space<vmem>>) attributes {dimension_semantics = [], scalar_prefetch = 0 : i64, scratch_operands = 0 : i64, tpu.core_type = #tpu.core_type<tc>} {
    %c0 = arith.constant 0 : index
    %c0_0 = arith.constant 0 : index
    %0 = vector.load %arg2[%c0, %c0_0] : memref<16x32xf32, #tpu.memory_space<vmem>>, vector<16x32xf32>
    %c0_1 = arith.constant 0 : index
    %c0_2 = arith.constant 0 : index
    %1 = vector.load %arg3[%c0_1, %c0_2] : memref<32x256xf32, #tpu.memory_space<vmem>>, vector<32x256xf32>
    %cst = arith.constant dense<0.000000e+00> : vector<16x256xf32>
    %2 = tpu.matmul %0, %1, %cst {dimension_numbers = #tpu.dot_dimension_numbers<[1], [0], [0], [1], [0, 0, 1, 1], [], []>} : vector<16x32xf32>, vector<32x256xf32>, vector<16x256xf32> -> vector<16x256xf32>
    %c0_3 = arith.constant 0 : index
    %c0_4 = arith.constant 0 : index
    %3 = vector.load %arg0[%c0_3, %c0_4] : memref<16x16xf32, #tpu.memory_space<vmem>>, vector<16x16xf32>
    %c0_5 = arith.constant 0 : index
    %c0_6 = arith.constant 0 : index
    %4 = vector.load %arg1[%c0_5, %c0_6] : memref<16x16xf32, #tpu.memory_space<vmem>>, vector<16x16xf32>
    %5 = vector.extract_strided_slice %2 {offsets = [0, 0], sizes = [16, 128], strides = [1, 1]} : vector<16x256xf32> to vector<16x128xf32>
    %6 = vector.extract_strided_slice %2 {offsets = [0, 128], sizes = [16, 128], strides = [1, 1]} : vector<16x256xf32> to vector<16x128xf32>
    %cst_7 = arith.constant dense<0.000000e+00> : vector<16x128xf32>
    %7 = tpu.matmul %3, %5, %cst_7 {dimension_numbers = #tpu.dot_dimension_numbers<[1], [0], [0], [1], [0, 0, 1, 1], [], []>} : vector<16x16xf32>, vector<16x128xf32>, vector<16x128xf32> -> vector<16x128xf32>
    %cst_8 = arith.constant dense<0.000000e+00> : vector<16x128xf32>
    %8 = tpu.matmul %3, %7, %cst_8 {dimension_numbers = #tpu.dot_dimension_numbers<[1], [0], [0], [1], [0, 0, 1, 1], [], []>} : vector<16x16xf32>, vector<16x128xf32>, vector<16x128xf32> -> vector<16x128xf32>
    %cst_9 = arith.constant 2.500000e-01 : f32
    %9 = vector.broadcast %cst_9 : f32 to vector<16x128xf32>
    %10 = arith.mulf %8, %9 : vector<16x128xf32>
    %cst_10 = arith.constant dense<0.000000e+00> : vector<16x16xf32>
    %11 = tpu.matmul %3, %4, %cst_10 {dimension_numbers = #tpu.dot_dimension_numbers<[1], [0], [0], [1], [0, 0, 1, 1], [], []>} : vector<16x16xf32>, vector<16x16xf32>, vector<16x16xf32> -> vector<16x16xf32>
    %cst_11 = arith.constant dense<0.000000e+00> : vector<16x128xf32>
    %12 = tpu.matmul %11, %6, %cst_11 {dimension_numbers = #tpu.dot_dimension_numbers<[1], [0], [0], [1], [0, 0, 1, 1], [], []>} : vector<16x16xf32>, vector<16x128xf32>, vector<16x128xf32> -> vector<16x128xf32>
    %cst_12 = arith.constant dense<0.000000e+00> : vector<16x128xf32>
    %13 = tpu.matmul %11, %12, %cst_12 {dimension_numbers = #tpu.dot_dimension_numbers<[1], [0], [0], [1], [0, 0, 1, 1], [], []>} : vector<16x16xf32>, vector<16x128xf32>, vector<16x128xf32> -> vector<16x128xf32>
    %cst_13 = arith.constant dense<0.000000e+00> : vector<16x128xf32>
    %14 = tpu.matmul %11, %13, %cst_13 {dimension_numbers = #tpu.dot_dimension_numbers<[1], [0], [0], [1], [0, 0, 1, 1], [], []>} : vector<16x16xf32>, vector<16x128xf32>, vector<16x128xf32> -> vector<16x128xf32>
    %cst_14 = arith.constant 0.000000e+00 : f32
    %15 = vector.broadcast %cst_14 : f32 to vector<16x128xf32>
    %16 = arith.subf %15, %14 : vector<16x128xf32>
    %c0_15 = arith.constant 0 : index
    %c0_16 = arith.constant 0 : index
    %17 = vector.load %arg4[%c0_15, %c0_16] : memref<1x128xf32, #tpu.memory_space<vmem>>, vector<1x128xf32>
    %c0_17 = arith.constant 0 : index
    %c0_18 = arith.constant 0 : index
    %18 = vector.load %arg5[%c0_17, %c0_18] : memref<1x128xf32, #tpu.memory_space<vmem>>, vector<1x128xf32>
    %cst_19 = arith.constant dense<0.000000e+00> : vector<128xf32>
    %19 = vector.multi_reduction <add>, %10, %cst_19 [0] : vector<16x128xf32> to vector<128xf32>
    %20 = vector.shape_cast %19 : vector<128xf32> to vector<1x128xf32>
    %cst_20 = arith.constant 1.600000e+01 : f32
    %21 = vector.broadcast %cst_20 : f32 to vector<1x128xf32>
    %22 = arith.divf %20, %21 : vector<1x128xf32>
    %23 = arith.mulf %10, %10 : vector<16x128xf32>
    %cst_21 = arith.constant dense<0.000000e+00> : vector<128xf32>
    %24 = vector.multi_reduction <add>, %23, %cst_21 [0] : vector<16x128xf32> to vector<128xf32>
    %25 = vector.shape_cast %24 : vector<128xf32> to vector<1x128xf32>
    %cst_22 = arith.constant 1.600000e+01 : f32
    %26 = vector.broadcast %cst_22 : f32 to vector<1x128xf32>
    %27 = arith.divf %25, %26 : vector<1x128xf32>
    %28 = arith.mulf %22, %22 : vector<1x128xf32>
    %29 = arith.subf %27, %28 : vector<1x128xf32>
    %cst_23 = arith.constant 0.000000e+00 : f32
    %30 = vector.broadcast %cst_23 : f32 to vector<1x128xf32>
    %31 = arith.maximumf %29, %30 : vector<1x128xf32>
    %32 = vector.broadcast %22 : vector<1x128xf32> to vector<16x128xf32>
    %33 = arith.subf %10, %32 : vector<16x128xf32>
    %cst_24 = arith.constant 9.99999974E-6 : f32
    %34 = vector.broadcast %cst_24 : f32 to vector<1x128xf32>
    %35 = arith.addf %31, %34 : vector<1x128xf32>
    %36 = math.rsqrt %35 : vector<1x128xf32>
    %37 = arith.mulf %36, %17 : vector<1x128xf32>
    %38 = vector.broadcast %37 : vector<1x128xf32> to vector<16x128xf32>
    %39 = arith.mulf %33, %38 : vector<16x128xf32>
    %40 = vector.broadcast %18 : vector<1x128xf32> to vector<16x128xf32>
    %41 = arith.addf %39, %40 : vector<16x128xf32>
    %c0_25 = arith.constant 0 : index
    %c0_26 = arith.constant 0 : index
    %42 = vector.load %arg6[%c0_25, %c0_26] : memref<1x128xf32, #tpu.memory_space<vmem>>, vector<1x128xf32>
    %c0_27 = arith.constant 0 : index
    %c0_28 = arith.constant 0 : index
    %43 = vector.load %arg7[%c0_27, %c0_28] : memref<1x128xf32, #tpu.memory_space<vmem>>, vector<1x128xf32>
    %cst_29 = arith.constant dense<0.000000e+00> : vector<128xf32>
    %44 = vector.multi_reduction <add>, %16, %cst_29 [0] : vector<16x128xf32> to vector<128xf32>
    %45 = vector.shape_cast %44 : vector<128xf32> to vector<1x128xf32>
    %cst_30 = arith.constant 1.600000e+01 : f32
    %46 = vector.broadcast %cst_30 : f32 to vector<1x128xf32>
    %47 = arith.divf %45, %46 : vector<1x128xf32>
    %48 = arith.mulf %16, %16 : vector<16x128xf32>
    %cst_31 = arith.constant dense<0.000000e+00> : vector<128xf32>
    %49 = vector.multi_reduction <add>, %48, %cst_31 [0] : vector<16x128xf32> to vector<128xf32>
    %50 = vector.shape_cast %49 : vector<128xf32> to vector<1x128xf32>
    %cst_32 = arith.constant 1.600000e+01 : f32
    %51 = vector.broadcast %cst_32 : f32 to vector<1x128xf32>
    %52 = arith.divf %50, %51 : vector<1x128xf32>
    %53 = arith.mulf %47, %47 : vector<1x128xf32>
    %54 = arith.subf %52, %53 : vector<1x128xf32>
    %cst_33 = arith.constant 0.000000e+00 : f32
    %55 = vector.broadcast %cst_33 : f32 to vector<1x128xf32>
    %56 = arith.maximumf %54, %55 : vector<1x128xf32>
    %57 = vector.broadcast %47 : vector<1x128xf32> to vector<16x128xf32>
    %58 = arith.subf %16, %57 : vector<16x128xf32>
    %cst_34 = arith.constant 9.99999974E-6 : f32
    %59 = vector.broadcast %cst_34 : f32 to vector<1x128xf32>
    %60 = arith.addf %56, %59 : vector<1x128xf32>
    %61 = math.rsqrt %60 : vector<1x128xf32>
    %62 = arith.mulf %61, %42 : vector<1x128xf32>
    %63 = vector.broadcast %62 : vector<1x128xf32> to vector<16x128xf32>
    %64 = arith.mulf %58, %63 : vector<16x128xf32>
    %65 = vector.broadcast %43 : vector<1x128xf32> to vector<16x128xf32>
    %66 = arith.addf %64, %65 : vector<16x128xf32>
    %67 = tpu.concatenate %41, %66 in 1 : vector<16x128xf32>, vector<16x128xf32> -> vector<16x256xf32>
    %c0_35 = arith.constant 0 : index
    %c0_36 = arith.constant 0 : index
    %68 = vector.load %arg8[%c0_35, %c0_36] : memref<256x128xf32, #tpu.memory_space<vmem>>, vector<256x128xf32>
    %cst_37 = arith.constant dense<0.000000e+00> : vector<16x128xf32>
    %69 = tpu.matmul %67, %68, %cst_37 {dimension_numbers = #tpu.dot_dimension_numbers<[1], [0], [0], [1], [0, 0, 1, 1], [], []>} : vector<16x256xf32>, vector<256x128xf32>, vector<16x128xf32> -> vector<16x128xf32>
    %c0_38 = arith.constant 0 : index
    %c0_39 = arith.constant 0 : index
    %70 = vector.load %arg9[%c0_38, %c0_39] : memref<1x128xf32, #tpu.memory_space<vmem>>, vector<1x128xf32>
    %71 = vector.broadcast %70 : vector<1x128xf32> to vector<16x128xf32>
    %72 = arith.addf %69, %71 : vector<16x128xf32>
    %c0_40 = arith.constant 0 : index
    %c0_41 = arith.constant 0 : index
    %73 = vector.load %arg10[%c0_40, %c0_41] : memref<16x128xf32, #tpu.memory_space<vmem>>, vector<16x128xf32>
    tpu.vector_store %arg10[%c0_40, %c0_41], %72 {strides = array<i32>} : memref<16x128xf32, #tpu.memory_space<vmem>>, vector<16x128xf32>,
    return
  }
}

</mosaic_0001>

<bundles_post_ra>
// kernel: item_graph_convolution.1
= control target key start
LH: loop header
LB: loop body
LE: loop exit
PB: predicated region body
PF: predicated region fallthrough
CT: control target
= control target key end

     0   :  { %v969_v4 = vmov 0.0   ;;  %s1209_s0 = inlined_call_operand.vmem [shape: f32[16,16], index: 0, kind: input, shape index: {}]   ;;  %s1210_s1 = inlined_call_operand.vmem [shape: f32[16,16], index: 1, kind: input, shape index: {}]   ;;  %s1211_s2 = inlined_call_operand.vmem [shape: f32[16,32], index: 2, kind: input, shape index: {}]   ;;  %s1212_s3 = inlined_call_operand.vmem [shape: f32[32,256], index: 3, kind: input, shape index: {}]   ;;  %s1213_s4 = inlined_call_operand.vmem [shape: f32[1,128], index: 4, kind: input, shape index: {}]   ;;  %s1214_s5 = inlined_call_operand.vmem [shape: f32[1,128], index: 5, kind: input, shape index: {}]   ;;  %s1215_s6 = inlined_call_operand.vmem [shape: f32[1,128], index: 6, kind: input, shape index: {}]   ;;  %s1216_s7 = inlined_call_operand.vmem [shape: f32[1,128], index: 7, kind: input, shape index: {}]   ;;  %s1217_s8 = inlined_call_operand.vmem [shape: f32[256,128], index: 8, kind: input, shape index: {}]   ;;  %s1218_s9 = inlined_call_operand.vmem [shape: f32[1,128], index: 9, kind: input, shape index: {}]   ;;  %s1219_s10 = inlined_call_operand.hbm [shape: f32[16,128], index: 10, kind: output, shape index: {}]  }
   0x1   :  { %v45_v0 = vld [vmem:[%s1212_s3 + $0x38] sm:$0xff]  ;;  %v44_v1 = vld [vmem:[%s1212_s3 + $0x30] sm:$0xff]  ;;  %v43_v2 = vld [vmem:[%s1212_s3 + $0x28] sm:$0xff]  ;;  %117 = vmatprep.mubr.f32.mxu0 %v969_v4 }
   0x2   :  { %77 = vmatprep.subr.mxu0 %v45_v0  ;;  %v42_v3 = vld [vmem:[%s1212_s3 + $0x20] sm:$0xff]  ;;  %v41_v5 = vld [vmem:[%s1212_s3 + $0x18] sm:$0xff]  ;;  %v40_v6 = vld [vmem:[%s1212_s3 + $0x10] sm:$0xff] }
   0x3   :  { %78 = vmatpush1.msra.mxu0 %v44_v1 }
   0x4   :  { %79 = vmatprep.subr.mxu0 %v43_v2 }
   0x5   :  { %15 = vsyncpa [#allocation3], 0  ;;  %80 = vmatpush1.msra.mxu0 %v42_v3  ;;  %v39_v7 = vld [vmem:[%s1212_s3 + $0x8] sm:$0xff]  ;;  %v38_v8 = vld [vmem:[%s1212_s3] sm:$0xff]  ;;  %vm46_vm0 = vcmask 261120   ;;  %vm134_vm1 = vcmask 130048   ;;  %v630_v51 = vlaneseq }
   0x6   :  { %81 = vmatprep.subr.mxu0 %v41_v5  ;;  %v36_v9 = vld [vmem:[%s1211_s2] sm:$0xff]  ;;  %v37_v10 = vld [vmem:[%s1211_s2 + $0x8] sm:$0xff]  ;;  %v717_v0 = vld [vmem:[%s1217_s8 + $0xf8] sm:$0xff] }
   0x7   :  { %82 = vmatpush1.msra.mxu0 %v40_v6  ;;  %v130_v11 = vld [vmem:[%s1209_s0] sm:$0xff]  ;;  %v131_v15 = vld [vmem:[%s1209_s0 + $0x8] sm:$0xff]  ;;  %v1079_v52 = vshrl.u32 %v630_v51, 7  ;;  %859 = vmatprep.subr.mxu1 %v717_v0  ;;  %v701_v1 = vld [vmem:[%s1217_s8 + $0x78] sm:$0xff] }
   0x8   :  { %83 = vmatprep.subr.mxu0 %v39_v7  ;;  %v133_v19 = vld [vmem:[%s1210_s1 + $0x8] sm:$0xff]  ;;  %v132_v20 = vld [vmem:[%s1210_s1] sm:$0xff]  ;;  %860 = vmatpush3.msra.mxu1 %v701_v1  ;;  %v716_v2 = vld [vmem:[%s1217_s8 + $0xf0] sm:$0xff] }
   0x9   :  { %84 = vmatpush1.msra.mxu0 %v38_v8  ;;  %v601_v53 = vld [vmem:[%s1213_s4] sm:$0x1]  ;;  %v632_v54 = vsub.s32 0, %v1079_v52  ;;  %v700_v3 = vld [vmem:[%s1217_s8 + $0x70] sm:$0xff]  ;;  %861 = vmatprep.subr.mxu1 %v716_v2  ;;  %v699_v5 = vld [vmem:[%s1217_s8 + $0x68] sm:$0xff] }
   0xa   :  { %818 = vmatmul.mubr.msk.f32.vlgmr.msra.gmra.mxu0 %vm46_vm0, %v36_v9  ;;  %862 = vmatpush3.msra.mxu1 %v700_v3  ;;  %v714_v6 = vld [vmem:[%s1217_s8 + $0xe0] sm:$0xff]  ;;  %v713_v8 = vld [vmem:[%s1217_s8 + $0xd8] sm:$0xff] }
   0xb   :  { %123 = vmatprep.mubr.f32.mxu0 %v969_v4  ;;  %v715_v4 = vld [vmem:[%s1217_s8 + $0xe8] sm:$0xff]  ;;  %v698_v7 = vld [vmem:[%s1217_s8 + $0x60] sm:$0xff]  ;;  %v697_v9 = vld [vmem:[%s1217_s8 + $0x58] sm:$0xff] }
   0xc   :  { %863 = vmatprep.subr.mxu1 %v715_v4  ;;  %v833_v4 = vld [vmem:[%s1216_s7] ss:$0 sm:$0xff] }
   0xd   :  { %864 = vmatpush3.msra.mxu1 %v699_v5 }
   0xe   :  { %819 = vmatmul.mubr.msk.f32.gmra.mxu0 %vm46_vm0, %v37_v10  ;;  %865 = vmatprep.subr.mxu1 %v714_v6  ;;  %v712_v10 = vld [vmem:[%s1217_s8 + $0xd0] sm:$0xff] }
   0xf   :  { %901 = vmatprep.mubr.msk.f32.mxu0 %vm134_vm1, %v130_v11  ;;  %866 = vmatpush3.msra.mxu1 %v698_v7  ;;  %v832_v7 = vld [vmem:[%s1214_s5] ss:$0 sm:$0xff]  ;;  %s970_s5 = smov [#allocation2]  }
  0x10   :  { %867 = vmatprep.subr.mxu1 %v713_v8  ;;  %s807_s7 = sshll.u32 %s970_s5, 4  ;;  %s808_s7 = int_to_ptr.vmem [resolvable:$true] %s807_s7 }
  0x11   :  { %868 = vmatpush3.msra.mxu1 %v697_v9  ;;  %s947_s16 = scalar_lea.vmem %s808_s7, 256  ;;  %p952_p1 = scmp.lt.s32.totalorder %s808_s7, %s808_s7 }
  0x12   :  { %869 = vmatprep.subr.mxu1 %v712_v10  ;;  %p948_p0 = scmp.ne.s32.totalorder %s808_s7, %s947_s16  ;;  %p953_p2 = scmp.lt.s32.totalorder %s947_s16, %s947_s16 }
  0x14   :  { %p954_p3 = por %p953_p2, %p952_p1 }
  0x16   :  { %p955_p4 = pnand %p954_p3, %p948_p0 }
  0xca   :  { %v119_v12 = vpop.f32.mrf.mxu0 }
  0xcc   :  { %v121_v13 = vpop.f32.mrf.mxu0 }
  0xce   :  { %v125_v14 = vpop.f32.mrf.mxu0 }
  0xcf   :  { %897 = vmatprep.subr.mxu0 %v125_v14 }
  0xd0   :  { %898 = vmatpush3.msra.mxu0 %v125_v14  ;;  %v127_v16 = vpop.f32.mrf.mxu0  ;;  %v710_v14 = vld [vmem:[%s1217_s8 + $0xc0] sm:$0xff] }
  0xd1   :  { %899 = vmatprep.subr.mxu0 %v119_v12 }
  0xd2   :  { %900 = vmatpush3.msra.mxu0 %v119_v12  ;;  %v711_v12 = vld [vmem:[%s1217_s8 + $0xc8] sm:$0xff] }
  0xd3   :  { %902 = vmatmul.mubr.msk.f32.vlgmr.msra.gmra.mxu0 %vm134_vm1, %v131_v15 }
  0xd4   :  { %908 = vmatprep.mubr.msk.f32.mxu0 %vm134_vm1, %v130_v11 }
 0x193   :  { %v903_v17 = vpop.f32.mrf.mxu0 }
 0x194   :  { %904 = vmatprep.subr.mxu0 %v903_v17 }
 0x195   :  { %v207_v18 = vpop.f32.mrf.mxu0  ;;  %905 = vmatpush3.msra.mxu0 %v903_v17  ;;  %v693_v17 = vld [vmem:[%s1217_s8 + $0x38] sm:$0xff] }
 0x196   :  { %906 = vmatprep.subr.mxu0 %v207_v18 }
 0x197   :  { %907 = vmatpush3.msra.mxu0 %v207_v18  ;;  %v708_v18 = vld [vmem:[%s1217_s8 + $0xb0] sm:$0xff] }
 0x198   :  { %909 = vmatmul.mubr.msk.f32.vlgmr.msra.gmra.mxu0 %vm134_vm1, %v131_v15  ;;  %911 = vmatprep.subr.mxu0 %v133_v19 }
 0x199   :  { %912 = vmatpush3.msra.mxu0 %v133_v19  ;;  %915 = vmatprep.mubr.msk.f32.mxu0 %vm134_vm1, %v130_v11  ;;  %v696_v11 = vld [vmem:[%s1217_s8 + $0x50] sm:$0xff] }
 0x19a   :  { %913 = vmatprep.subr.mxu0 %v132_v20  ;;  %870 = vmatpush3.msra.mxu1 %v696_v11  ;;  %v692_v19 = vld [vmem:[%s1217_s8 + $0x30] sm:$0xff]  ;;  %v834_v11 = vld [vmem:[%s1218_s9] ss:$0 sm:$0xff] }
 0x19b   :  { %914 = vmatpush3.msra.mxu0 %v132_v20  ;;  %871 = vmatprep.subr.mxu1 %v711_v12  ;;  %v707_v20 = vld [vmem:[%s1217_s8 + $0xa8] sm:$0xff] }
 0x19c   :  { %916 = vmatmul.mubr.msk.f32.vlgmr.msra.gmra.mxu0 %vm134_vm1, %v131_v15  ;;  %918 = vmatprep.subr.mxu0 %v127_v16  ;;  %v694_v15 = vld [vmem:[%s1217_s8 + $0x40] sm:$0xff] }
 0x19d   :  { %919 = vmatpush3.msra.mxu0 %v127_v16  ;;  %v709_v16 = vld [vmem:[%s1217_s8 + $0xb8] sm:$0xff] }
 0x19e   :  { %920 = vmatprep.subr.mxu0 %v121_v13 }
 0x19f   :  { %921 = vmatpush3.msra.mxu0 %v121_v13  ;;  %v695_v13 = vld [vmem:[%s1217_s8 + $0x48] sm:$0xff] }
 0x1a0   :  { %872 = vmatpush3.msra.mxu1 %v695_v13 }
 0x1a1   :  { %873 = vmatprep.subr.mxu1 %v710_v14 }
 0x1a2   :  { %874 = vmatpush3.msra.mxu1 %v694_v15 }
 0x1a3   :  { %875 = vmatprep.subr.mxu1 %v709_v16 }
 0x1a4   :  { %876 = vmatpush3.msra.mxu1 %v693_v17 }
 0x1a5   :  { %877 = vmatprep.subr.mxu1 %v708_v18 }
 0x1a6   :  { %878 = vmatpush3.msra.mxu1 %v692_v19 }
 0x1a7   :  { %879 = vmatprep.subr.mxu1 %v707_v20 }
 0x258   :  { %v910_v21 = vpop.f32.mrf.mxu0 }
 0x259   :  { %v292_v22 = vmul.f32 0.25, %v910_v21  ;;  %v691_v21 = vld [vmem:[%s1217_s8 + $0x28] sm:$0xff] }
 0x25a   :  { %v282_v23 = vpop.f32.mrf.mxu0  ;;  %880 = vmatpush3.msra.mxu1 %v691_v21 }
 0x25b   :  { %v291_v24 = vmul.f32 0.25, %v282_v23  ;;  %v613_v26 = vmul.f32 %v292_v22, %v292_v22  ;;  %v690_v23 = vld [vmem:[%s1217_s8 + $0x20] sm:$0xff] }
 0x25c   :  { %v917_v25 = vpop.f32.mrf.mxu0 }
 0x25d   :  { %v603_v27 = vadd.f32 %v292_v22, %v291_v24  ;;  %v612_v28 = vmul.f32 %v291_v24, %v291_v24 }
 0x25e   :  { %v359_v29 = vpop.f32.mrf.mxu0 }
 0x25f   :  { %v604_v30 = vrot.slane %v603_v27, 4  ;;  %v614_v31 = vadd.f32 %v613_v26, %v612_v28  ;;  %922 = vmatprep.mubr.msk.f32.mxu0 %vm134_vm1, %v359_v29  ;;  %v704_v26 = vld [vmem:[%s1217_s8 + $0x90] sm:$0xff]  ;;  %v703_v28 = vld [vmem:[%s1217_s8 + $0x88] sm:$0xff] }
 0x260   :  { %923 = vmatmul.mubr.msk.f32.vlgmr.msra.gmra.mxu0 %vm134_vm1, %v917_v25 }
 0x261   :  { %v605_v32 = vadd.f32 %v604_v30, %v603_v27  ;;  %v615_v33 = vrot.slane %v614_v31, 4  ;;  %929 = vmatprep.mubr.msk.f32.mxu0 %vm134_vm1, %v359_v29  ;;  %v688_v27 = vld [vmem:[%s1217_s8 + $0x10] sm:$0xff]  ;;  %v702_v30 = vld [vmem:[%s1217_s8 + $0x80] sm:$0xff] }
 0x263   :  { %v606_v34 = vrot.slane %v605_v32, 2  ;;  %v616_v35 = vadd.f32 %v615_v33, %v614_v31  ;;  %v686_v31 = vld [vmem:[%s1217_s8] sm:$0xff] }
 0x265   :  { %v607_v36 = vadd.f32 %v606_v34, %v605_v32  ;;  %v617_v37 = vrot.slane %v616_v35, 2 }
 0x267   :  { %v608_v38 = vrot.slane %v607_v36, 1  ;;  %v618_v39 = vadd.f32 %v617_v37, %v616_v35 }
 0x269   :  { %v609_v40 = vadd.f32 %v608_v38, %v607_v36  ;;  %v619_v41 = vrot.slane %v618_v39, 1 }
 0x26b   :  { %v611_v42 = vmul.f32 0.0625, %v609_v40  ;;  %v620_v43 = vadd.f32 %v619_v41, %v618_v39 }
 0x26d   :  { %v621_v44 = vmul.f32 0.0625, %v620_v43  ;;  %v622_v45 = vmul.f32 %v611_v42, %v611_v42  ;;  %v625_v46 = vsub.f32 %v291_v24, %v611_v42  ;;  %v626_v47 = vsub.f32 %v292_v22, %v611_v42  ;;  %v706_v22 = vld [vmem:[%s1217_s8 + $0xa0] sm:$0xff]  ;;  %v705_v24 = vld [vmem:[%s1217_s8 + $0x98] sm:$0xff] }
 0x26e   :  { %881 = vmatprep.subr.mxu1 %v706_v22 }
 0x26f   :  { %v623_v48 = vsub.f32 %v621_v44, %v622_v45  ;;  %882 = vmatpush3.msra.mxu1 %v690_v23 }
 0x270   :  { %883 = vmatprep.subr.mxu1 %v705_v24 }
 0x271   :  { %v624_v49 = vmax.f32 %v623_v48, 0.0 }
 0x273   :  { %v627_v50 = vadd.f32 1e-05, %v624_v49 }
 0x275   :  { %943 = vrsqrt.f32 %v627_v50 }
 0x282   :  { %v944_v55 = vpop.eup %943 }
 0x283   :  { %v629_v56 = vmul.f32 %v944_v55, %v601_v53 }
 0x285   :  { %v633_v57 = vrot.slane %v629_v56, %v632_v54 }
 0x287   :  { %v1087_v58 = vmul.f32 %v633_v57, %v625_v46  ;;  %v1089_v59 = vmul.f32 %v633_v57, %v626_v47 }
 0x289   :  { %v642_v9 = vadd.f32 %v832_v7, %v1087_v58  ;;  %v643_v52 = vadd.f32 %v832_v7, %v1089_v59 }
 0x320   :  { %v924_v60 = vpop.f32.mrf.mxu0 }
 0x321   :  { %925 = vmatprep.subr.mxu0 %v924_v60 }
 0x322   :  { %v440_v61 = vpop.f32.mrf.mxu0  ;;  %926 = vmatpush3.msra.mxu0 %v924_v60 }
 0x323   :  { %927 = vmatprep.subr.mxu0 %v440_v61 }
 0x324   :  { %928 = vmatpush3.msra.mxu0 %v440_v61 }
 0x325   :  { %930 = vmatmul.mubr.msk.f32.vlgmr.msra.gmra.mxu0 %vm134_vm1, %v917_v25 }
 0x326   :  { %936 = vmatprep.mubr.msk.f32.mxu0 %vm134_vm1, %v359_v29  ;;  %v687_v29 = vld [vmem:[%s1217_s8 + $0x8] sm:$0xff] }
 0x3e5   :  { %v931_v62 = vpop.f32.mrf.mxu0 }
 0x3e6   :  { %932 = vmatprep.subr.mxu0 %v931_v62 }
 0x3e7   :  { %v515_v63 = vpop.f32.mrf.mxu0  ;;  %933 = vmatpush3.msra.mxu0 %v931_v62  ;;  %v644_v62 = vld [vmem:[%s1215_s6] sm:$0x1] }
 0x3e8   :  { %934 = vmatprep.subr.mxu0 %v515_v63 }
 0x3e9   :  { %935 = vmatpush3.msra.mxu0 %v515_v63 }
 0x3ea   :  { %937 = vmatmul.mubr.msk.f32.vlgmr.msra.gmra.mxu0 %vm134_vm1, %v917_v25  ;;  %v689_v25 = vld [vmem:[%s1217_s8 + $0x18] sm:$0xff] }
 0x3eb   :  { %884 = vmatpush3.msra.mxu1 %v689_v25 }
 0x3ec   :  { %885 = vmatprep.subr.mxu1 %v704_v26 }
 0x3ed   :  { %886 = vmatpush3.msra.mxu1 %v688_v27 }
 0x3ee   :  { %887 = vmatprep.subr.mxu1 %v703_v28 }
 0x3ef   :  { %888 = vmatpush3.msra.mxu1 %v687_v29 }
 0x3f0   :  { %889 = vmatprep.subr.mxu1 %v702_v30 }
 0x3f1   :  { %890 = vmatpush3.msra.mxu1 %v686_v31 }
 0x4aa   :  { %v938_v32 = vpop.f32.mrf.mxu0 }
 0x4ab   :  { %v600_v33 = vsub.f32 0.0, %v938_v32 }
 0x4ac   :  { %v590_v34 = vpop.f32.mrf.mxu0 }
 0x4ad   :  { %v599_v35 = vsub.f32 0.0, %v590_v34  ;;  %v655_v36 = vmul.f32 %v600_v33, %v600_v33 }
 0x4af   :  { %v646_v37 = vadd.f32 %v600_v33, %v599_v35  ;;  %v654_v38 = vmul.f32 %v599_v35, %v599_v35 }
 0x4b1   :  { %v647_v39 = vrot.slane %v646_v37, 4  ;;  %v656_v40 = vadd.f32 %v655_v36, %v654_v38 }
 0x4b3   :  { %v648_v41 = vadd.f32 %v647_v39, %v646_v37  ;;  %v657_v42 = vrot.slane %v656_v40, 4 }
 0x4b5   :  { %v649_v43 = vrot.slane %v648_v41, 2  ;;  %v658_v44 = vadd.f32 %v657_v42, %v656_v40 }
 0x4b7   :  { %v650_v45 = vadd.f32 %v649_v43, %v648_v41  ;;  %v659_v46 = vrot.slane %v658_v44, 2 }
 0x4b9   :  { %v651_v47 = vrot.slane %v650_v45, 1  ;;  %v660_v48 = vadd.f32 %v659_v46, %v658_v44 }
 0x4bb   :  { %v661_v49 = vrot.slane %v660_v48, 1  ;;  %v652_v50 = vadd.f32 %v651_v47, %v650_v45 }
 0x4bd   :  { %v662_v51 = vadd.f32 %v661_v49, %v660_v48  ;;  %v653_v53 = vmul.f32 0.0625, %v652_v50 }
 0x4bf   :  { %v663_v55 = vmul.f32 0.0625, %v662_v51  ;;  %v664_v56 = vmul.f32 %v653_v53, %v653_v53  ;;  %v667_v1 = vsub.f32 %v599_v35, %v653_v53  ;;  %v668_v2 = vsub.f32 %v600_v33, %v653_v53 }
 0x4c1   :  { %v665_v57 = vsub.f32 %v663_v55, %v664_v56 }
 0x4c3   :  { %v666_v60 = vmax.f32 %v665_v57, 0.0 }
 0x4c5   :  { %v669_v61 = vadd.f32 1e-05, %v666_v60 }
 0x4c7   :  { %945 = vrsqrt.f32 %v669_v61 }
 0x4d4   :  { %v946_v63 = vpop.eup %945 }
 0x4d5   :  { %v671_v0 = vmul.f32 %v946_v63, %v644_v62 }
 0x4d7   :  { %v675_v3 = vrot.slane %v671_v0, %v632_v54 }
 0x4d9   :  { %v676_v5 = vmul.f32 %v675_v3, %v667_v1  ;;  %v677_v6 = vmul.f32 %v675_v3, %v668_v2 }
 0x4db   :  { %v684_v8 = vadd.f32 %v833_v4, %v676_v5  ;;  %v685_v10 = vadd.f32 %v833_v4, %v677_v6 }
 0x4dd   :  { %789 = vmatprep.mubr.f32.mxu1 %v684_v8 }
 0x4de   :  { %790 = vmatmul.mubr.f32.vlgmr.msra.gmra.mxu1 %v642_v9 }
 0x4df   :  { %794 = vmatprep.mubr.f32.mxu1 %v685_v10 }
 0x4e2   :  { %795 = vmatmul.mubr.f32.gmra.mxu1 %v643_v52 }
 0x59e   :  { %v891_v54 = vpop.f32.mrf.mxu1 }
 0x5a0   :  { %v892_v12 = vpop.f32.mrf.mxu1 }
 0x5a1   :  { %v893_v13 = vadd.f32 %v892_v12, %v891_v54 }
 0x5a2   :  { %v894_v14 = vpop.f32.mrf.mxu1 }
 0x5a3   :  { %v792_v15 = vadd.f32 %v893_v13, %v834_v11 }
 0x5a4   :  { %v895_v16 = vpop.f32.mrf.mxu1 }
 0x5a5   :  { %800 = vst [vmem:[#allocation2] sm:$0xff] %v792_v15  ;;  %v896_v58 = vadd.f32 %v895_v16, %v894_v14 }
 0x5a7   :  { %v797_v17 = vadd.f32 %v896_v58, %v834_v11 }
 0x5a9   :  { %801 = vst [vmem:[#allocation2 + $0x8] sm:$0xff] %v797_v17 }
 0x5aa   :  { %958 = shalt.err (!%p955_p4)
}
 0x5ab   :  { %s971_s9 = smov 128   ;;  %s972_s17 = smov 8  }
 0x5ac   :  { %813 = dma.vmem_to_hbm [thread:$0]  %s808_s7, 256, %s1219_s10, [#allocation3], %s971_s9, %s971_s9, %s972_s17  }
 0x5ad   :  { %967 = dma.done.wait [#allocation3], 256  }
 0x5ae   :  { %968 = vsyncadd [#allocation3], 4294967040 }
 0x5af   :  { %817 = vsyncpa [#allocation3], 1 }

</bundles_post_ra>
